<compile_context>
chip_gen: v5e
topology: v5e:2x2
jax: 0.10.0
libtpu: 0.0.40
codegen_flags: <defaults>
</compile_context>

<pallas_src>
import functools

import jax
import jax.numpy as jnp
from jax.experimental import pallas as pl
from jax.experimental.pallas import tpu as pltpu


# ---------------------------------------------------------------------------
# Pass 1: per-sample, per-channel sum / sum-of-squares over lane-dense tiles.
# ---------------------------------------------------------------------------
def _stats_kernel(x_ref, stats_ref, *, hw, tile, tiles_per_chunk, masked):
    """x_ref: (1, C, tile) input tile.  stats_ref: (1, 1, 2, C) f32 accumulator
    resident across the innermost (spatial-tile) grid axis; row 0 = sum,
    row 1 = sum of squares, C on the lane axis."""
    @pl.when(pl.program_id(2) == 0)
    def _init():
        stats_ref[...] = jnp.zeros_like(stats_ref)

    x = x_ref[0].astype(jnp.float32)                        # (C, tile)
    if masked:
        # Last spatial tile is partial: zero padded lanes before reducing.
        gtile = pl.program_id(0) * tiles_per_chunk + pl.program_id(2)
        lane = jax.lax.broadcasted_iota(jnp.int32, x.shape, 1)
        x = jnp.where(gtile * tile + lane < hw, x, 0.0)

    s = jnp.sum(x, axis=1)[None, :]                         # (1, C)
    sq = jnp.sum(x * x, axis=1)[None, :]                    # (1, C)
    upd = jnp.concatenate([s, sq], axis=0)                  # (2, C) sublane concat
    stats_ref[...] = stats_ref[...] + upd[None, None]


# ---------------------------------------------------------------------------
# Pass 2: pure streaming normalize, y = x * scale + bias (per sample/channel).
# ---------------------------------------------------------------------------
def _normalize_kernel(scale_ref, bias_ref, x_ref, o_ref):
    x = x_ref[0].astype(jnp.float32)                        # (C, tile)
    o_ref[0] = (x * scale_ref[0] + bias_ref[0]).astype(o_ref.dtype)


# ---------------------------------------------------------------------------
# Wrapper helpers.
# ---------------------------------------------------------------------------
def _tpu_vmem_capacity_bytes():
    try:
        return int(pltpu.get_tpu_info().vmem_capacity_bytes)
    except Exception:
        return 128 << 20       # v5e / v6e physical VMEM as a safe default


def _pick_spatial_tile(hw, c, itemsize, per_buffer_budget):
    """Lane-dense spatial tile.  Whole H*W when it fits the per-buffer budget
    (always a legal full-extent block); otherwise a large multiple-of-128 tile,
    with the partial last block handled via cdiv grid + in-kernel masking."""
    max_lanes = per_buffer_budget // max(1, c * itemsize)
    max_lanes = max(128, (max_lanes // 128) * 128)
    if hw <= max_lanes:
        return hw
    return max_lanes


def _derive_scale_bias(stats, alpha, *, split, hw, eps, train):
    """stats: (N, 2, C) f32 per-sample (sum, sum_sq).  Returns f32 (N, C, 1)
    scale and bias such that y = x * scale + bias."""
    n = stats.shape[0]
    sums = stats[:, 0, :]                                   # (N, C)
    ssqs = stats[:, 1, :]                                   # (N, C)
    if train:
        cnt_s = float(split * hw)
        cnt_t = float((n - split) * hw)
        mu_s = jnp.sum(sums[:split], axis=0) / cnt_s        # (C,)
        mu_t = jnp.sum(sums[split:], axis=0) / cnt_t
        # Biased variance via E[x^2] - mu^2, clamped at 0 before rsqrt.
        var_s = jnp.maximum(jnp.sum(ssqs[:split], axis=0) / cnt_s - mu_s * mu_s, 0.0)
        var_t = jnp.maximum(jnp.sum(ssqs[split:], axis=0) / cnt_t - mu_t * mu_t, 0.0)
        a = alpha
        mu_sa = a * mu_s + (1.0 - a) * mu_t
        mu_ta = a * mu_t + (1.0 - a) * mu_s
        var_sa = a * var_s + (1.0 - a) * var_t
        var_ta = a * var_t + (1.0 - a) * var_s
        sc_s = jax.lax.rsqrt(var_sa + eps)
        sc_t = jax.lax.rsqrt(var_ta + eps)
        is_src = (jnp.arange(n) < split)[:, None]           # (N, 1)
        mu_n = jnp.where(is_src, mu_sa[None, :], mu_ta[None, :])    # (N, C)
        sc_n = jnp.where(is_src, sc_s[None, :], sc_t[None, :])      # (N, C)
    else:
        cnt = float(n * hw)
        mu = jnp.sum(sums, axis=0) / cnt
        var = jnp.maximum(jnp.sum(ssqs, axis=0) / cnt - mu * mu, 0.0)
        sc = jax.lax.rsqrt(var + eps)
        mu_n = jnp.broadcast_to(mu[None, :], (n, mu.shape[0]))
        sc_n = jnp.broadcast_to(sc[None, :], (n, sc.shape[0]))
    scale = sc_n[..., None].astype(jnp.float32)             # (N, C, 1)
    bias = (-mu_n * sc_n)[..., None].astype(jnp.float32)    # (N, C, 1)
    return scale, bias


def domain_alignment(x_nchw, alpha, *, batch_size, split, eps=1e-5,
                     donate_input=False):
    """Pallas implementation of DomainAlignment.forward. Input is NCHW."""
    N, C, H, W = x_nchw.shape
    hw = H * W
    x = x_nchw.reshape(N, C, hw)           # metadata-only reshape, no transpose

    # Generation-aware budgets: 8 MiB/buffer + 64 MiB scoped limit on v5e/v6e
    # (128 MiB physical), 4 MiB/buffer + 32 MiB limit on v7x (64 MiB physical).
    phys_vmem = _tpu_vmem_capacity_bytes()
    per_buffer_budget = max(1 << 20, phys_vmem // 16)
    vmem_limit = int(min(phys_vmem // 2, 64 << 20))

    tile = _pick_spatial_tile(hw, C, x.dtype.itemsize, per_buffer_budget)
    num_tiles = pl.cdiv(hw, tile)
    masked = (hw % tile) != 0

    # Split pass 1's spatial loop into 2 megacore-parallel chunks so v7x's two
    # TensorCores stay balanced when N is 1, 2 or odd (no-op on v5e/v6e).
    n_chunks = 2 if (num_tiles % 2 == 0) else 1
    tiles_per_chunk = num_tiles // n_chunks

    # ---- pass 1: partial per-sample per-channel (sum, sum_sq) ----
    stats_kernel = functools.partial(
        _stats_kernel, hw=hw, tile=tile, tiles_per_chunk=tiles_per_chunk,
        masked=masked)
    partial_stats = pl.pallas_call(
        stats_kernel,
        out_shape=jax.ShapeDtypeStruct((n_chunks, N, 2, C), jnp.float32),
        grid=(n_chunks, N, tiles_per_chunk),
        in_specs=[pl.BlockSpec(
            (1, C, tile), lambda c, n, t: (n, 0, c * tiles_per_chunk + t))],
        out_specs=pl.BlockSpec((1, 1, 2, C), lambda c, n, t: (c, n, 0, 0)),
        compiler_params=pltpu.CompilerParams(
            dimension_semantics=("parallel", "parallel", "arbitrary"),
            vmem_limit_bytes=vmem_limit),
    )(x)
    stats = jnp.sum(partial_stats, axis=0)                  # (N, 2, C), tiny

    # ---- stat mixing hoisted out of the kernels (O(N*C) plain-JAX math) ----
    scale, bias = _derive_scale_bias(
        stats, alpha, split=split, hw=hw, eps=eps, train=(N == batch_size))

    # ---- pass 2: pure streaming normalize y = x*scale + bias ----
    alias = {2: 0} if donate_input else {}
    out = pl.pallas_call(
        _normalize_kernel,
        out_shape=jax.ShapeDtypeStruct((N, C, hw), x_nchw.dtype),
        grid=(N, num_tiles),
        in_specs=[
            pl.BlockSpec((1, C, 1), lambda n, t: (n, 0, 0)),     # scale
            pl.BlockSpec((1, C, 1), lambda n, t: (n, 0, 0)),     # bias
            pl.BlockSpec((1, C, tile), lambda n, t: (n, 0, t)),  # x tile
        ],
        out_specs=pl.BlockSpec((1, C, tile), lambda n, t: (n, 0, t)),
        input_output_aliases=alias,
        compiler_params=pltpu.CompilerParams(
            dimension_semantics=("parallel", "parallel"),
            vmem_limit_bytes=vmem_limit),
    )(scale, bias, x)

    return out.reshape(N, C, H, W)


# ---------------- pure-JAX reference (for verification only) ----------------
def _reference(x_nchw, alpha, *, batch_size, split, eps=1e-5):
    x = x_nchw.astype(jnp.float32)
    if x.shape[0] == batch_size:
        src, tgt = x[:split], x[split:]
        mu_s = jnp.mean(src, axis=(0, 2, 3), keepdims=True)
        mu_t = jnp.mean(tgt, axis=(0, 2, 3), keepdims=True)
        var_s = jnp.mean((src - mu_s) ** 2, axis=(0, 2, 3), keepdims=True)
        var_t = jnp.mean((tgt - mu_t) ** 2, axis=(0, 2, 3), keepdims=True)
        mu_sa = alpha * mu_s + (1 - alpha) * mu_t
        mu_ta = alpha * mu_t + (1 - alpha) * mu_s
        var_sa = alpha * var_s + (1 - alpha) * var_t
        var_ta = alpha * var_t + (1 - alpha) * var_s
        src_n = (src - mu_sa) / jnp.sqrt(var_sa + eps)
        tgt_n = (tgt - mu_ta) / jnp.sqrt(var_ta + eps)
        return jnp.concatenate([src_n, tgt_n], axis=0).astype(x_nchw.dtype)
    mu = jnp.mean(x, axis=(0, 2, 3), keepdims=True)
    var = jnp.mean((x - mu) ** 2, axis=(0, 2, 3), keepdims=True)
    return ((x - mu) / jnp.sqrt(var + eps)).astype(x_nchw.dtype)


if __name__ == "__main__":
    # Module "parameters" (from __init__ signature):
    BATCH_SIZE = 4   # source + target joint batch
    SPLIT = 2        # first SPLIT samples are source, rest are target
    EPS = 1e-5

    key = jax.random.PRNGKey(0)
    k1, k2, k3 = jax.random.split(key, 3)
    alpha = 0.7

    # Training-path input (N == batch_size -> autodial2d branch)
    x = jax.random.normal(k1, (BATCH_SIZE, 8, 16, 16), dtype=jnp.float32)
    y = domain_alignment(x, alpha, batch_size=BATCH_SIZE, split=SPLIT, eps=EPS)
    y = jax.block_until_ready(y)
    y_ref = _reference(x, alpha, batch_size=BATCH_SIZE, split=SPLIT, eps=EPS)
    assert y.shape == x.shape
    assert jnp.allclose(y, y_ref, atol=1e-4, rtol=1e-4)

    # Inference-path input (N != batch_size -> batchnorm2d branch)
    x2 = jax.random.normal(k2, (3, 8, 16, 16), dtype=jnp.float32)
    y2 = domain_alignment(x2, alpha, batch_size=BATCH_SIZE, split=SPLIT, eps=EPS)
    y2 = jax.block_until_ready(y2)
    y2_ref = _reference(x2, alpha, batch_size=BATCH_SIZE, split=SPLIT, eps=EPS)
    assert jnp.allclose(y2, y2_ref, atol=1e-4, rtol=1e-4)

    # Non-128-aligned spatial extent (full-extent block path), training branch.
    x3 = jax.random.normal(k3, (BATCH_SIZE, 8, 10, 10), dtype=jnp.float32)
    y3 = domain_alignment(x3, alpha, batch_size=BATCH_SIZE, split=SPLIT, eps=EPS)
    y3 = jax.block_until_ready(y3)
    y3_ref = _reference(x3, alpha, batch_size=BATCH_SIZE, split=SPLIT, eps=EPS)
    assert jnp.allclose(y3, y3_ref, atol=1e-4, rtol=1e-4)

    print("KERNEL_OK")
</pallas_src>

<mosaic_0001>
module attributes {stable_mosaic.version = 11 : i64} {
  func.func @_stats_kernel(%arg0: i32, %arg1: i32, %arg2: i32, %arg3: memref<1x8x256xf32, #tpu.memory_space<vmem>>, %arg4: memref<1x1x2x8xf32, #tpu.memory_space<vmem>>) attributes {dimension_semantics = [#tpu.dimension_semantics<parallel>, #tpu.dimension_semantics<parallel>, #tpu.dimension_semantics<arbitrary>], iteration_bounds = array<i64: 1, 4, 1>, scalar_prefetch = 0 : i64, scratch_operands = 0 : i64, tpu.core_type = #tpu.core_type<tc>, window_params = [{transform_indices = @transform_0, window_bounds = array<i64: 1, 8, 256>}, {transform_indices = @transform_1, window_bounds = array<i64: 1, 1, 2, 8>}]} {
    %c0_i32 = arith.constant 0 : i32
    %0 = arith.cmpi eq, %arg2, %c0_i32 : i32
    %1 = arith.extui %0 : i1 to i32
    %c0_i32_0 = arith.constant 0 : i32
    %2 = arith.cmpi ne, %1, %c0_i32_0 : i32
    scf.if %2 {
      %cst_12 = arith.constant 0.000000e+00 : f32
      %15 = vector.broadcast %cst_12 : f32 to vector<1x1x2x8xf32>
      %c0_13 = arith.constant 0 : index
      %c0_14 = arith.constant 0 : index
      %c0_15 = arith.constant 0 : index
      %c0_16 = arith.constant 0 : index
      %16 = vector.load %arg4[%c0_13, %c0_14, %c0_15, %c0_16] : memref<1x1x2x8xf32, #tpu.memory_space<vmem>>, vector<1x1x2x8xf32>
      tpu.vector_store %arg4[%c0_13, %c0_14, %c0_15, %c0_16], %15 {strides = array<i32>} : memref<1x1x2x8xf32, #tpu.memory_space<vmem>>, vector<1x1x2x8xf32>,
    } else {
    }
    %c0 = arith.constant 0 : index
    %c0_1 = arith.constant 0 : index
    %c0_2 = arith.constant 0 : index
    %3 = vector.load %arg3[%c0, %c0_1, %c0_2] : memref<1x8x256xf32, #tpu.memory_space<vmem>>, vector<1x8x256xf32>
    %4 = vector.shape_cast %3 : vector<1x8x256xf32> to vector<8x256xf32>
    %cst = arith.constant dense<0.000000e+00> : vector<8xf32>
    %5 = vector.multi_reduction <add>, %4, %cst [1] : vector<8x256xf32> to vector<8xf32>
    %6 = vector.shape_cast %5 : vector<8xf32> to vector<1x8xf32>
    %7 = arith.mulf %4, %4 : vector<8x256xf32>
    %cst_3 = arith.constant dense<0.000000e+00> : vector<8xf32>
    %8 = vector.multi_reduction <add>, %7, %cst_3 [1] : vector<8x256xf32> to vector<8xf32>
    %9 = vector.shape_cast %8 : vector<8xf32> to vector<1x8xf32>
    %10 = tpu.concatenate %6, %9 in 0 : vector<1x8xf32>, vector<1x8xf32> -> vector<2x8xf32>
    %c0_4 = arith.constant 0 : index
    %c0_5 = arith.constant 0 : index
    %c0_6 = arith.constant 0 : index
    %c0_7 = arith.constant 0 : index
    %11 = vector.load %arg4[%c0_4, %c0_5, %c0_6, %c0_7] : memref<1x1x2x8xf32, #tpu.memory_space<vmem>>, vector<1x1x2x8xf32>
    %12 = vector.shape_cast %10 : vector<2x8xf32> to vector<1x1x2x8xf32>
    %13 = arith.addf %11, %12 : vector<1x1x2x8xf32>
    %c0_8 = arith.constant 0 : index
    %c0_9 = arith.constant 0 : index
    %c0_10 = arith.constant 0 : index
    %c0_11 = arith.constant 0 : index
    %14 = vector.load %arg4[%c0_8, %c0_9, %c0_10, %c0_11] : memref<1x1x2x8xf32, #tpu.memory_space<vmem>>, vector<1x1x2x8xf32>
    tpu.vector_store %arg4[%c0_8, %c0_9, %c0_10, %c0_11], %13 {strides = array<i32>} : memref<1x1x2x8xf32, #tpu.memory_space<vmem>>, vector<1x1x2x8xf32>,
    return
  }
  func.func @transform_0(%arg0: i32, %arg1: i32, %arg2: i32) -> (i32, i32, i32) {
    %c1_i32 = arith.constant 1 : i32
    %0 = arith.muli %arg0, %c1_i32 : i32
    %1 = arith.addi %0, %arg2 : i32
    %c0_i32 = arith.constant 0 : i32
    %c0_i32_0 = arith.constant 0 : i32
    return %arg1, %c0_i32, %1 : i32, i32, i32
  }
  func.func @transform_1(%arg0: i32, %arg1: i32, %arg2: i32) -> (i32, i32, i32, i32) {
    %c0_i32 = arith.constant 0 : i32
    %c0_i32_0 = arith.constant 0 : i32
    %c0_i32_1 = arith.constant 0 : i32
    return %arg0, %arg1, %c0_i32, %c0_i32_0 : i32, i32, i32, i32
  }
}

</mosaic_0001>

<bundles_post_ra>
// kernel: tpu_custom_call.1
= control target key start
LH: loop header
LB: loop body
LE: loop exit
PB: predicated region body
PF: predicated region fallthrough
CT: control target
= control target key end

     0   :  { %6 = vsyncpa [#allocation3], 0  ;;  %s624_s0 = inlined_call_operand.hbm [shape: f32[4,8,256], index: 0, kind: input, shape index: {}]   ;;  %s625_s1 = inlined_call_operand.hbm [shape: f32[1,4,2,8], index: 1, kind: output, shape index: {}]  }
   0x1   :  { %8 = vsyncpa [#allocation3 + $0x1], 0 }
   0x2   :  { %9 = vsyncpa [#allocation4], 0 }
   0x3   :  { %11 = vsyncpa [#allocation4 + $0x1], 0  ;;  %s503_s6 = smov 0   ;;  %s505_s7 = smov 0  }
   0x4   :  { %s507_s8 = smov 0   ;;  %s509_s9 = smov 0  }
   0x5   :  { %s511_s10 = smov 0   ;;  %s513_s11 = smov 0  }
   0x6 LB: > { %s300_s12 = sadd.s32 4294967295, %s490_s11   ;;  %s301_s13 = sadd.s32 4294967294, %s490_s11   ;;  %s490_s11 = sphi %s513_s11, %s17_s11   ;;  %s486_s10 = sphi %s511_s10, %s634_s10   ;;  %s482_s9 = sphi %s509_s9, %s633_s9   ;;  %s478_s8 = sphi %s507_s8, %s632_s8   ;;  %s474_s7 = sphi %s505_s7, %s631_s7   ;;  %s470_s6 = sphi %s503_s6, %s630_s6  }
   0x7   : > { %s32_s14 = sadd.s32 1, %s486_s10  ;;  %s47_s15 = sadd.s32 1, %s478_s8 }
   0x8   : > { %p34_p0 = scmp.ge.s32.totalorder %s32_s14, 4  ;;  %p54_p1 = scmp.ne.s32.totalorder %s478_s8, %s474_s7 }
   0x9   : > { %p55_p2 = scmp.eq.s32.totalorder %s490_s11, 0  ;;  %p60_p3 = scmp.ne.s32.totalorder %s474_s7, %s470_s6 }
   0xa   : > { %s636_s14 = smov (%p34_p0, %s32_s14), 0  ;;  %p61_p5 = scmp.eq.s32.totalorder %s300_s12, 0 }
   0xb   : > { %p544_p4 = por %p55_p2, %p54_p1  ;;  %s42_s17 = ssub.s32 %s486_s10, %s636_s14 }
   0xc   : > { %p86_p6 = scmp.eq.s32.totalorder %s300_s12, 3  ;;  %p45_p7 = scmp.eq.s32.totalorder %s42_s17, 0 }
   0xd   : > { %p550_p8 = por %p61_p5, %p60_p3  ;;  %p92_p10 = scmp.eq.s32.totalorder %s301_s13, 3 }
   0xe   : > { %p554_p9 = por %p86_p6, %p54_p1  ;;  %p327_p12 = scmp.lt.s32.totalorder %s490_s11, 4 }
   0xf   : > { %s559_s20 = scalar_select %p45_p7, %s478_s8, %s47_s15  }
  0x10   : > { %p561_p11 = por %p92_p10, %p60_p3  ;;  %s112_s22 = sand.u32 1, %s478_s8  }
  0x11   : > { %s304_s23 = sshll.u32 %s112_s22, 4  ;;  %s314_s24 = sshll.u32 %s486_s10, 4 }
  0x12   : > { %s124_s27 = scalar_lea.hbm %s624_s0, %s314_s24  ;;  %s116_s28 = scalar_lea.vmem [#allocation2], %s304_s23 }
  0x13   : > { %s128_s29 = sshll.u32 %s116_s28, 4  ;;  %s126_s30 = sshll.u32 %s124_s27, 4  ;;  %s129_s29 = int_to_ptr.vmem [resolvable:$true] %s128_s29  ;;  %s127_s30 = int_to_ptr.hbm [resolvable:$true] %s126_s30 }
  0x14   : > { %p320_p13 = pnand %p327_p12, %p544_p4  ;;  %p307_p0 = scmp.ge.s32.totalorder %s490_s11, 1 }
  0x15   : > { %p133_p1 = scmp.lt.s32.totalorder %s490_s11, 5  ;;  %s113_s2 = scalar_lea.sflag [#allocation3], %s112_s22 }
  0x16   : > { %322 = dma.hbm_to_vmem [thread:$0]  (!%p320_p13), %s127_s30, 256, %s129_s29, %s113_s2  }
  0x17   : > { %p134_p2 = pnand %p307_p0, %p133_p1 }
  0x18   : > { %s576_s3 = sand.u32 (!%p134_p2), 1, %s474_s7  }
  0x19   : > { %137 = sbr.rel (%p134_p2) target bundleno = 166 (0xa6), region = 24  ;;  %s308_s4 = sshll.u32 (!%p134_p2), %s576_s3, 4 }
  0x1a   : > { %s140_s5 = scalar_lea.sflag (!%p134_p2), [#allocation3], %s576_s3  ;;  %s143_s12 = scalar_lea.vmem (!%p134_p2), [#allocation2], %s308_s4 }
  0x1e   : > { %461 = dma.done.wait (%p550_p8), %s140_s5, 256  }
  0x1f   : > { %463 = vsyncadd (%p550_p8), %s140_s5, 4294967040  ;;  %s309_s13 = sshll.u32 %s576_s3, 1  ;;  %vm169_vm0 = vcmask 58368   ;;  %v492_v0 = vmov 0.0   ;;  %v171_v1 = vld [vmem:[%s143_s12] sm:$0xff]  ;;  %v172_v2 = vld [vmem:[%s143_s12 + $0x8] sm:$0xff]  ;;  %v182_v8 = vlaneseq }
  0x20   : > { %s162_s15 = scalar_lea.vmem [#allocation5], %s309_s13  ;;  %v173_v3 = vadd.f32 %v172_v2, %v171_v1  ;;  %v176_v4 = vmul.f32 %v171_v1, %v171_v1  ;;  %v177_v5 = vmul.f32 %v172_v2, %v172_v2  ;;  %s311_s16 = sshll.u32 %s482_s9, 1  ;;  %vm189_vm1 = vcmask 1040384  }
  0x21   : > { %170 = vst.msk [vmem:[%s162_s15] sm:$0x3] %vm169_vm0, %v492_v0  ;;  %v183_v9 = vand.u32 127, %v182_v8  ;;  %s208_s22 = scalar_lea.hbm %s625_s1, %s311_s16  ;;  %s210_s23 = sshll.u32 %s162_s15, 4  ;;  %s211_s23 = int_to_ptr.vmem [resolvable:$true] %s210_s23 }
  0x22   : > { %174 = vadd.xlane.f32.xlu0 %v173_v3  ;;  %v178_v6 = vadd.f32 %v177_v5, %v176_v4  ;;  %s212_s24 = sshll.u32 %s208_s22, 4  ;;  %s196_s9 = scalar_lea.sflag [#allocation4], %s576_s3  ;;  %s213_s24 = int_to_ptr.hbm [resolvable:$true] %s212_s24 }
  0x23   : > { %s422_s25 = sshra.s32 %s213_s24, 4  ;;  %s428_s29 = scalar_lea.hbm %s625_s1, 8  ;;  %s423_s25 = int_to_ptr.hbm [resolvable:$true] %s422_s25 }
  0x24   : > { %s424_s26 = scalar_lea.hbm %s423_s25, 2  ;;  %p429_p6 = scmp.lt.s32.totalorder %s423_s25, %s625_s1 }
  0x25   : > { %p425_p3 = scmp.ne.s32.totalorder %s423_s25, %s424_s26  ;;  %p430_p7 = scmp.lt.s32.totalorder %s428_s29, %s424_s26 }
  0x27   : > { %p426_p4 = pnand %p425_p3, %p554_p9  ;;  %p431_p8 = por %p430_p7, %p429_p6 }
  0x28   : > { %v191_v13 = vld [vmem:[%s162_s15] sm:$0x3] }
  0x29   : > { %p427_p5 = pneg %p426_p4 }
  0x2a   : > { %179 = vadd.xlane.f32.xlu0 %v178_v6 }
  0x2b   : > { %p432_p10 = pnand %p431_p8, %p427_p5 }
  0x95   : > { %v175_v7 = vpop.xlane.xlu0 %174 }
  0x96   : > { %v184_v11 = vperm.slane %v175_v7, %v183_v9 }
  0x9d   : > { %v180_v10 = vpop.xlane.xlu0 %179 }
  0x9e   : > { %v187_v12 = vperm.slane %v180_v10, %v183_v9 }
  0xa0   : > { %v190_v14 = vsel %vm189_vm1, %v184_v11, %v187_v12 }
  0xa1   : > { %v192_v15 = vadd.f32 %v191_v13, %v190_v14 }
  0xa3   : > { %194 = vst.msk [vmem:[%s162_s15] sm:$0x3] %vm169_vm0, %v192_v15 }
  0xa4   : > { %435 = shalt.err (!%p432_p10)
}
  0xa5   : > { %317 = dma.vmem_to_hbm [thread:$0]  (%p554_p9), %s211_s23, 32, %s213_s24, %s196_s9  }
  0xa6 PF: > { %p328_p12 = scmp.ge.s32.totalorder %s490_s11, 2  ;;  %s224_s3 = sand.u32 1, %s470_s6  }
  0xa7   : > { %s225_s4 = scalar_lea.sflag [#allocation4], %s224_s3 }
  0xa8   : > { %p324_p13 = pnand %p328_p12, %p561_p11 }
  0xaa   : > { %p325_p0 = pneg %p324_p13 }
  0xac   : > { %465 = dma.done.wait (%p325_p0), %s225_s4, 32  }
  0xad   : > { %467 = vsyncadd (%p325_p0), %s225_s4, 4294967264  ;;  %s17_s11 = sadd.s32 1, %s490_s11   ;;  %s630_s6 = smov %s474_s7 }
  0xae   : > { %p14_p1 = scmp.ge.s32.totalorder %s17_s11, 6   ;;  %s631_s7 = smov %s478_s8 }
  0xaf   : > { %s632_s8 = smov %s559_s20  ;;  %s633_s9 = smov %s486_s10 }
  0xb0   : > { %s634_s10 = smov %s636_s14  ;;  %16 = sbr.rel (!%p14_p1) target bundleno = 6 (0x6), region = 73 }
  0xb5   :  { %231 = vsyncpa [#allocation3], 1 }
  0xb6   :  { %233 = vsyncpa [#allocation3 + $0x1], 1 }
  0xb7   :  { %234 = vsyncpa [#allocation4], 1 }
  0xb8   :  { %236 = vsyncpa [#allocation4 + $0x1], 1 }

</bundles_post_ra>
